<compile_context>
chip_gen: v7x
topology: tpu7x:2x2x1
jax: 0.10.0
libtpu: 0.0.40
codegen_flags: <defaults>
</compile_context>

<pallas_src>
import jax
import jax.numpy as jnp
from jax import lax
from jax.experimental import pallas as pl
from jax.experimental.pallas import tpu as pltpu

_BIG = 1e30  # padding / init sentinel; real squared distances are far below


def _round_up(x, m):
    return ((x + m - 1) // m) * m


def _make_chamfer_kernel(TN, TM, RC, d2_rows):
    nb = TM // 128        # 128-lane blocks per j tile
    nchunks = TN // RC    # MXU row chunks per i tile

    def kernel(a_ref, b_ref, d1_ref, d2_ref, d1_part):
        # a_ref  : (1, TN, 8)            augmented gt tile (point-major)
        # b_ref  : (1, 8, TM)            augmented pred tile (channel-first)
        # d1_ref : (1, 1, TN)            nearest-pred sq dist per gt point
        # d2_ref : (1, M_pad//128, 128)  nearest-gt sq dist per pred point
        #                                (resident accumulator across (i, j))
        # d1_part: (TN, 128)  VMEM scratch: running lane-block min across j
        i = pl.program_id(1)
        j = pl.program_id(2)
        nj = pl.num_programs(2)

        @pl.when(j == 0)
        def _():  # new (batch, i): reset the d1 running minima
            d1_part[...] = jnp.full((TN, 128), _BIG, jnp.float32)

        @pl.when(jnp.logical_and(i == 0, j == 0))
        def _():  # new batch: reset the resident d2 output block
            d2_ref[...] = jnp.full((1, d2_rows, 128), _BIG, jnp.float32)

        b_blk = b_ref[0]                                    # (8, TM)

        def chunk_body(r, colmin8):
            off = pl.multiple_of(r * RC, RC)
            a_chunk = a_ref[0, pl.ds(off, RC), :]           # (RC, 8)
            # Full squared-distance chunk straight off the MXU:
            #   s[n, m] = -2<p1_n, p2_m> + |p1_n|^2 + |p2_m|^2
            s = jnp.dot(a_chunk, b_blk,
                        preferred_element_type=jnp.float32)  # (RC, TM)

            # d1: fold the TM lanes down to one 128-lane block (VPU minima)
            # and fold it into the running minima immediately, so the chunk
            # never needs to stay live / spill.
            part = s[:, 0:128]
            for t in range(1, nb):
                part = jnp.minimum(part, s[:, t * 128:(t + 1) * 128])
            rows = pl.ds(off, RC)
            d1_part[rows, :] = jnp.minimum(d1_part[rows, :], part)

            # d2: fold the RC sublanes down to 8 with vreg-wise VPU minima;
            # the final 8->1 cross-sublane reduce is deferred to once per step.
            cm = s[0:8, :]
            for q in range(1, RC // 8):
                cm = jnp.minimum(cm, s[q * 8:(q + 1) * 8, :])
            return jnp.minimum(colmin8, cm)

        colmin8 = lax.fori_loop(0, nchunks, chunk_body,
                                jnp.full((8, TM), _BIG, jnp.float32),
                                unroll=True)

        # ---- d2: one 8-sublane reduce, then min-fold into the resident
        # output block (no scratch copy / end-of-batch flush needed).
        colmin = jnp.min(colmin8, axis=0, keepdims=True)    # (1, TM)
        for t in range(nb):
            row = pl.ds(j * nb + t, 1)
            d2_ref[0, row, :] = jnp.minimum(d2_ref[0, row, :],
                                            colmin[:, t * 128:(t + 1) * 128])

        # ---- d1: cross-lane reduce + lane-dense store, once per (batch, i),
        # done in (128, 128) transpose blocks.
        @pl.when(j == nj - 1)
        def _():
            for c in range(TN // 128):
                cols = slice(c * 128, (c + 1) * 128)
                d1_ref[0, :, cols] = jnp.min(d1_part[cols, :].T,
                                             axis=0, keepdims=True)

    return kernel


def chamfer_distance(registration_pred, registration_gt, coords,
                     *, tile_n=1024, tile_m=1024):
    """All inputs: (B, 3, N) float32 (PyTorch channel-first layout)."""
    B, C, N = coords.shape
    assert C == 3
    f32 = jnp.float32

    coords = coords.astype(f32)
    p1 = coords + registration_gt.astype(f32)    # gt  point cloud (B, 3, N)
    p2 = coords + registration_pred.astype(f32)  # gen point cloud (B, 3, N)
    M = N

    # Lane-aligned tiles; in-kernel chunking means the per-tile VMEM cost is
    # only the 8-channel operand blocks, so large tiles are cheap.
    TN = _round_up(min(tile_n, _round_up(N, 128)), 128)
    TM = _round_up(min(tile_m, _round_up(M, 128)), 128)
    RC = min(128, TN)             # MXU row-chunk size inside the kernel
    N_pad = _round_up(N, TN)
    M_pad = _round_up(M, TM)

    # Augmented encodings: one MXU contraction over 8 channels yields the full
    # squared distance  -2<x,y> + |x|^2 + |y|^2  with no in-kernel adds.
    sq1 = jnp.sum(p1 * p1, axis=1)          # (B, N)
    sq2 = jnp.sum(p2 * p2, axis=1)          # (B, N)
    one = jnp.ones_like(sq1)
    zero = jnp.zeros_like(sq1)
    a_aug = jnp.stack(
        [p1[:, 0], p1[:, 1], p1[:, 2], sq1, one, zero, zero, zero],
        axis=-1)                                                   # (B, N, 8)
    b_aug = jnp.stack(
        [-2.0 * p2[:, 0], -2.0 * p2[:, 1], -2.0 * p2[:, 2], one, sq2,
         zero, zero, zero],
        axis=1)                                                    # (B, 8, N)

    # Pad to tile multiples with a huge squared-norm sentinel so padded points
    # never win a nearest-neighbour min; padded rows/cols are sliced off below.
    if N_pad > N:
        pad = jnp.zeros((B, N_pad - N, 8), f32)
        pad = pad.at[:, :, 3].set(_BIG).at[:, :, 4].set(1.0)
        a_aug = jnp.concatenate([a_aug, pad], axis=1)
    if M_pad > M:
        pad = jnp.zeros((B, 8, M_pad - M), f32)
        pad = pad.at[:, 3, :].set(1.0).at[:, 4, :].set(_BIG)
        b_aug = jnp.concatenate([b_aug, pad], axis=2)

    grid = (B, N_pad // TN, M_pad // TM)
    d2_rows = M_pad // 128

    # Explicit VMEM budget: raise past v5e's 16 MiB scoped default, stay well
    # within v7x's 64 MiB physical per-TC VMEM.
    est = 4 * (2 * TN * 8            # a blocks (double-buffered)
               + 2 * 8 * TM          # b blocks
               + 2 * 8 * TN          # d1 output blocks (sublane-padded)
               + 2 * M_pad           # resident d2 output block
               + TN * 128            # d1_part scratch
               + 2 * RC * TM)        # in-flight MXU chunk / spill headroom
    vmem_limit = int(min(max(est + (8 << 20), 32 << 20), 64 << 20))

    d1, d2 = pl.pallas_call(
        _make_chamfer_kernel(TN, TM, RC, d2_rows),
        out_shape=(
            jax.ShapeDtypeStruct((B, 1, N_pad), f32),      # min over pred
            jax.ShapeDtypeStruct((B, d2_rows, 128), f32),  # min over gt
        ),
        grid_spec=pltpu.PrefetchScalarGridSpec(
            num_scalar_prefetch=0,
            grid=grid,
            in_specs=[
                pl.BlockSpec((1, TN, 8), lambda b, i, j: (b, i, 0)),
                pl.BlockSpec((1, 8, TM), lambda b, i, j: (b, 0, j)),
            ],
            out_specs=[
                pl.BlockSpec((1, 1, TN), lambda b, i, j: (b, 0, i)),
                pl.BlockSpec((1, d2_rows, 128), lambda b, i, j: (b, 0, 0)),
            ],
            scratch_shapes=[
                pltpu.VMEM((TN, 128), f32),   # d1 running lane-block min
            ],
        ),
        compiler_params=pltpu.CompilerParams(
            dimension_semantics=("parallel", "arbitrary", "arbitrary"),
            vmem_limit_bytes=vmem_limit,
        ),
    )(a_aug, b_aug)

    dist1 = d1[:, 0, :N]                     # (B, N)
    dist2 = d2.reshape(B, M_pad)[:, :M]      # (B, M) — free reshape, lane-dense
    return dist1.sum(axis=1).mean() + dist2.sum(axis=1).mean()


def _chamfer_reference(registration_pred, registration_gt, coords):
    gt_pc = coords + registration_gt
    gen_pc = coords + registration_pred
    pc1 = jnp.transpose(gt_pc, (0, 2, 1))
    pc2 = jnp.transpose(gen_pc, (0, 2, 1))
    d = -2.0 * jnp.einsum("bnc,bmc->bnm", pc1, pc2,
                          precision=lax.Precision.HIGHEST)
    d = d + jnp.sum(pc1 ** 2, -1)[:, :, None]
    d = d + jnp.sum(pc2 ** 2, -1)[:, None, :]
    dist1 = jnp.min(d, axis=-1)
    dist2 = jnp.min(d, axis=1)
    return dist1.sum(axis=1).mean() + dist2.sum(axis=1).mean()


if __name__ == "__main__":
    # Tolerances cover f32-MXU vs HIGHEST-precision XLA accumulation noise.
    RTOL = ATOL = 1e-3

    def _check(seed, B, N, **tiles):
        k1, k2, k3 = jax.random.split(jax.random.PRNGKey(seed), 3)
        coords = jax.random.normal(k1, (B, 3, N), dtype=jnp.float32)
        reg_gt = 0.1 * jax.random.normal(k2, (B, 3, N), dtype=jnp.float32)
        reg_pred = 0.1 * jax.random.normal(k3, (B, 3, N), dtype=jnp.float32)
        out = jax.block_until_ready(
            chamfer_distance(reg_pred, reg_gt, coords, **tiles))
        ref = _chamfer_reference(reg_pred, reg_gt, coords)
        assert jnp.allclose(out, ref, rtol=RTOL, atol=ATOL), (N, tiles, out, ref)

    # Case 1: tiny spec-sized shapes (single tile per batch, heavy padding).
    _check(0, B=2, N=16)
    # Case 2: multi-tile 2x2 grid, 2 row chunks & 2 lane blocks per tile,
    # padding -> exercises both running-min accumulators and per-tile gating.
    _check(1, B=2, N=300, tile_n=256, tile_m=256)
    # Case 3: default 1024x1024 tiles (2x2 grid, 8 row chunks, 8 lane blocks)
    # with padding -> exercises the default production path end-to-end.
    _check(2, B=2, N=1030)

    print("KERNEL_OK")
</pallas_src>

<mosaic_0001>
module attributes {stable_mosaic.version = 11 : i64} {
  func.func @kernel(%arg0: i32, %arg1: i32, %arg2: i32, %arg3: memref<1x128x8xf32, #tpu.memory_space<vmem>>, %arg4: memref<1x8x128xf32, #tpu.memory_space<vmem>>, %arg5: memref<1x1x128xf32, #tpu.memory_space<vmem>>, %arg6: memref<1x1x128xf32, #tpu.memory_space<vmem>>, %arg7: memref<128x128xf32, #tpu.memory_space<vmem>>) attributes {dimension_semantics = [#tpu.dimension_semantics<parallel>, #tpu.dimension_semantics<arbitrary>, #tpu.dimension_semantics<arbitrary>], iteration_bounds = array<i64: 2, 1, 1>, scalar_prefetch = 0 : i64, scratch_operands = 1 : i64, tpu.core_type = #tpu.core_type<tc>, window_params = [{transform_indices = @transform_0, window_bounds = array<i64: 1, 128, 8>}, {transform_indices = @transform_1, window_bounds = array<i64: 1, 8, 128>}, {transform_indices = @transform_2, window_bounds = array<i64: 1, 1, 128>}, {transform_indices = @transform_3, window_bounds = array<i64: 1, 1, 128>}]} {
    %c0_i32 = arith.constant 0 : i32
    %0 = arith.cmpi eq, %arg2, %c0_i32 : i32
    %1 = arith.extui %0 : i1 to i32
    %c0_i32_0 = arith.constant 0 : i32
    %2 = arith.cmpi ne, %1, %c0_i32_0 : i32
    scf.if %2 {
      %cst_21 = arith.constant 1.000000e+30 : f32
      %69 = vector.broadcast %cst_21 : f32 to vector<128x128xf32>
      %c0_22 = arith.constant 0 : index
      %c0_23 = arith.constant 0 : index
      %70 = vector.load %arg7[%c0_22, %c0_23] : memref<128x128xf32, #tpu.memory_space<vmem>>, vector<128x128xf32>
      tpu.vector_store %arg7[%c0_22, %c0_23], %69 {strides = array<i32>} : memref<128x128xf32, #tpu.memory_space<vmem>>, vector<128x128xf32>,
    } else {
    }
    %c0_i32_1 = arith.constant 0 : i32
    %3 = arith.cmpi eq, %arg1, %c0_i32_1 : i32
    %c0_i32_2 = arith.constant 0 : i32
    %4 = arith.cmpi eq, %arg2, %c0_i32_2 : i32
    %5 = arith.andi %3, %4 : i1
    %6 = arith.extui %5 : i1 to i32
    %c0_i32_3 = arith.constant 0 : i32
    %7 = arith.cmpi ne, %6, %c0_i32_3 : i32
    scf.if %7 {
      %cst_21 = arith.constant 1.000000e+30 : f32
      %69 = vector.broadcast %cst_21 : f32 to vector<1x1x128xf32>
      %c0_22 = arith.constant 0 : index
      %c0_23 = arith.constant 0 : index
      %c0_24 = arith.constant 0 : index
      %70 = vector.load %arg6[%c0_22, %c0_23, %c0_24] : memref<1x1x128xf32, #tpu.memory_space<vmem>>, vector<1x1x128xf32>
      tpu.vector_store %arg6[%c0_22, %c0_23, %c0_24], %69 {strides = array<i32>} : memref<1x1x128xf32, #tpu.memory_space<vmem>>, vector<1x1x128xf32>,
    } else {
    }
    %c0 = arith.constant 0 : index
    %c0_4 = arith.constant 0 : index
    %c0_5 = arith.constant 0 : index
    %8 = vector.load %arg4[%c0, %c0_4, %c0_5] : memref<1x8x128xf32, #tpu.memory_space<vmem>>, vector<1x8x128xf32>
    %9 = vector.shape_cast %8 : vector<1x8x128xf32> to vector<8x128xf32>
    %cst = arith.constant 1.000000e+30 : f32
    %10 = vector.broadcast %cst : f32 to vector<8x128xf32>
    %c0_i32_6 = arith.constant 0 : i32
    %c128_i32 = arith.constant 128 : i32
    %11 = arith.muli %c0_i32_6, %c128_i32 : i32
    %12 = tpu.assume_multiple %11, 128 : i32
    %c0_7 = arith.constant 0 : index
    %13 = arith.index_cast %12 : i32 to index
    %c0_8 = arith.constant 0 : index
    %14 = vector.load %arg3[%c0_7, %13, %c0_8] : memref<1x128x8xf32, #tpu.memory_space<vmem>>, vector<1x128x8xf32>
    %15 = vector.shape_cast %14 : vector<1x128x8xf32> to vector<128x8xf32>
    %cst_9 = arith.constant dense<0.000000e+00> : vector<128x128xf32>
    %16 = tpu.matmul %15, %9, %cst_9 {dimension_numbers = #tpu.dot_dimension_numbers<[1], [0], [0], [1], [0, 0, 1, 1], [], []>} : vector<128x8xf32>, vector<8x128xf32>, vector<128x128xf32> -> vector<128x128xf32>
    %17 = arith.index_cast %12 : i32 to index
    %c0_10 = arith.constant 0 : index
    %18 = vector.load %arg7[%17, %c0_10] : memref<128x128xf32, #tpu.memory_space<vmem>>, vector<128x128xf32>
    %19 = arith.minimumf %18, %16 : vector<128x128xf32>
    %20 = arith.index_cast %12 : i32 to index
    %c0_11 = arith.constant 0 : index
    %21 = vector.load %arg7[%20, %c0_11] : memref<128x128xf32, #tpu.memory_space<vmem>>, vector<128x128xf32>
    tpu.vector_store %arg7[%20, %c0_11], %19 {strides = array<i32>} : memref<128x128xf32, #tpu.memory_space<vmem>>, vector<128x128xf32>,
    %22 = vector.extract_strided_slice %16 {offsets = [0, 0], sizes = [8, 128], strides = [1, 1]} : vector<128x128xf32> to vector<8x128xf32>
    %23 = vector.extract_strided_slice %16 {offsets = [8, 0], sizes = [8, 128], strides = [1, 1]} : vector<128x128xf32> to vector<8x128xf32>
    %24 = arith.minimumf %22, %23 : vector<8x128xf32>
    %25 = vector.extract_strided_slice %16 {offsets = [16, 0], sizes = [8, 128], strides = [1, 1]} : vector<128x128xf32> to vector<8x128xf32>
    %26 = arith.minimumf %24, %25 : vector<8x128xf32>
    %27 = vector.extract_strided_slice %16 {offsets = [24, 0], sizes = [8, 128], strides = [1, 1]} : vector<128x128xf32> to vector<8x128xf32>
    %28 = arith.minimumf %26, %27 : vector<8x128xf32>
    %29 = vector.extract_strided_slice %16 {offsets = [32, 0], sizes = [8, 128], strides = [1, 1]} : vector<128x128xf32> to vector<8x128xf32>
    %30 = arith.minimumf %28, %29 : vector<8x128xf32>
    %31 = vector.extract_strided_slice %16 {offsets = [40, 0], sizes = [8, 128], strides = [1, 1]} : vector<128x128xf32> to vector<8x128xf32>
    %32 = arith.minimumf %30, %31 : vector<8x128xf32>
    %33 = vector.extract_strided_slice %16 {offsets = [48, 0], sizes = [8, 128], strides = [1, 1]} : vector<128x128xf32> to vector<8x128xf32>
    %34 = arith.minimumf %32, %33 : vector<8x128xf32>
    %35 = vector.extract_strided_slice %16 {offsets = [56, 0], sizes = [8, 128], strides = [1, 1]} : vector<128x128xf32> to vector<8x128xf32>
    %36 = arith.minimumf %34, %35 : vector<8x128xf32>
    %37 = vector.extract_strided_slice %16 {offsets = [64, 0], sizes = [8, 128], strides = [1, 1]} : vector<128x128xf32> to vector<8x128xf32>
    %38 = arith.minimumf %36, %37 : vector<8x128xf32>
    %39 = vector.extract_strided_slice %16 {offsets = [72, 0], sizes = [8, 128], strides = [1, 1]} : vector<128x128xf32> to vector<8x128xf32>
    %40 = arith.minimumf %38, %39 : vector<8x128xf32>
    %41 = vector.extract_strided_slice %16 {offsets = [80, 0], sizes = [8, 128], strides = [1, 1]} : vector<128x128xf32> to vector<8x128xf32>
    %42 = arith.minimumf %40, %41 : vector<8x128xf32>
    %43 = vector.extract_strided_slice %16 {offsets = [88, 0], sizes = [8, 128], strides = [1, 1]} : vector<128x128xf32> to vector<8x128xf32>
    %44 = arith.minimumf %42, %43 : vector<8x128xf32>
    %45 = vector.extract_strided_slice %16 {offsets = [96, 0], sizes = [8, 128], strides = [1, 1]} : vector<128x128xf32> to vector<8x128xf32>
    %46 = arith.minimumf %44, %45 : vector<8x128xf32>
    %47 = vector.extract_strided_slice %16 {offsets = [104, 0], sizes = [8, 128], strides = [1, 1]} : vector<128x128xf32> to vector<8x128xf32>
    %48 = arith.minimumf %46, %47 : vector<8x128xf32>
    %49 = vector.extract_strided_slice %16 {offsets = [112, 0], sizes = [8, 128], strides = [1, 1]} : vector<128x128xf32> to vector<8x128xf32>
    %50 = arith.minimumf %48, %49 : vector<8x128xf32>
    %51 = vector.extract_strided_slice %16 {offsets = [120, 0], sizes = [8, 128], strides = [1, 1]} : vector<128x128xf32> to vector<8x128xf32>
    %52 = arith.minimumf %50, %51 : vector<8x128xf32>
    %53 = arith.minimumf %10, %52 : vector<8x128xf32>
    %c1_i32 = arith.constant 1 : i32
    %cst_12 = arith.constant dense<0x7F800000> : vector<128xf32>
    %54 = vector.multi_reduction <minimumf>, %53, %cst_12 [0] : vector<8x128xf32> to vector<128xf32>
    %55 = vector.shape_cast %54 : vector<128xf32> to vector<1x128xf32>
    %c1_i32_13 = arith.constant 1 : i32
    %56 = arith.muli %arg2, %c1_i32_13 : i32
    %c0_i32_14 = arith.constant 0 : i32
    %57 = arith.addi %56, %c0_i32_14 : i32
    %c0_15 = arith.constant 0 : index
    %58 = arith.index_cast %57 : i32 to index
    %c0_16 = arith.constant 0 : index
    %59 = vector.load %arg6[%c0_15, %58, %c0_16] : memref<1x1x128xf32, #tpu.memory_space<vmem>>, vector<1x1x128xf32>
    %60 = vector.shape_cast %59 : vector<1x1x128xf32> to vector<1x128xf32>
    %61 = arith.minimumf %60, %55 : vector<1x128xf32>
    %c0_17 = arith.constant 0 : index
    %62 = arith.index_cast %57 : i32 to index
    %c0_18 = arith.constant 0 : index
    %63 = vector.load %arg6[%c0_17, %62, %c0_18] : memref<1x1x128xf32, #tpu.memory_space<vmem>>, vector<1x1x128xf32>
    %64 = vector.shape_cast %63 : vector<1x1x128xf32> to vector<1x128xf32>
    %65 = vector.shape_cast %61 : vector<1x128xf32> to vector<1x1x128xf32>
    tpu.vector_store %arg6[%c0_17, %62, %c0_18], %65 {strides = array<i32>} : memref<1x1x128xf32, #tpu.memory_space<vmem>>, vector<1x1x128xf32>,
    %c0_i32_19 = arith.constant 0 : i32
    %66 = arith.cmpi eq, %arg2, %c0_i32_19 : i32
    %67 = arith.extui %66 : i1 to i32
    %c0_i32_20 = arith.constant 0 : i32
    %68 = arith.cmpi ne, %67, %c0_i32_20 : i32
    scf.if %68 {
      %c0_21 = arith.constant 0 : index
      %c0_22 = arith.constant 0 : index
      %69 = vector.load %arg7[%c0_21, %c0_22] : memref<128x128xf32, #tpu.memory_space<vmem>>, vector<128x128xf32>
      %70 = tpu.transpose %69, [1, 0] : vector<128x128xf32> -> vector<128x128xf32>
      %cst_23 = arith.constant dense<0x7F800000> : vector<128xf32>
      %71 = vector.multi_reduction <minimumf>, %70, %cst_23 [0] : vector<128x128xf32> to vector<128xf32>
      %72 = vector.shape_cast %71 : vector<128xf32> to vector<1x128xf32>
      %c0_24 = arith.constant 0 : index
      %c0_25 = arith.constant 0 : index
      %c0_26 = arith.constant 0 : index
      %73 = vector.load %arg5[%c0_24, %c0_25, %c0_26] : memref<1x1x128xf32, #tpu.memory_space<vmem>>, vector<1x1x128xf32>
      %74 = vector.shape_cast %73 : vector<1x1x128xf32> to vector<1x128xf32>
      %75 = vector.shape_cast %72 : vector<1x128xf32> to vector<1x1x128xf32>
      tpu.vector_store %arg5[%c0_24, %c0_25, %c0_26], %75 {strides = array<i32>} : memref<1x1x128xf32, #tpu.memory_space<vmem>>, vector<1x1x128xf32>,
    } else {
    }
    return
  }
  func.func @transform_0(%arg0: i32, %arg1: i32, %arg2: i32) -> (i32, i32, i32) {
    %c0_i32 = arith.constant 0 : i32
    %c0_i32_0 = arith.constant 0 : i32
    return %arg0, %arg1, %c0_i32 : i32, i32, i32
  }
  func.func @transform_1(%arg0: i32, %arg1: i32, %arg2: i32) -> (i32, i32, i32) {
    %c0_i32 = arith.constant 0 : i32
    %c0_i32_0 = arith.constant 0 : i32
    return %arg0, %c0_i32, %arg2 : i32, i32, i32
  }
  func.func @transform_2(%arg0: i32, %arg1: i32, %arg2: i32) -> (i32, i32, i32) {
    %c0_i32 = arith.constant 0 : i32
    %c0_i32_0 = arith.constant 0 : i32
    return %arg0, %c0_i32, %arg1 : i32, i32, i32
  }
  func.func @transform_3(%arg0: i32, %arg1: i32, %arg2: i32) -> (i32, i32, i32) {
    %c0_i32 = arith.constant 0 : i32
    %c0_i32_0 = arith.constant 0 : i32
    %c0_i32_1 = arith.constant 0 : i32
    return %arg0, %c0_i32, %c0_i32_0 : i32, i32, i32
  }
}

</mosaic_0001>

<bundles_post_ra>
// kernel: tpu_custom_call.1
= control target key start
LH: loop header
LB: loop body
LE: loop exit
PB: predicated region body
PF: predicated region fallthrough
CT: control target
= control target key end

     0   :  { %9 = vsyncpa [#allocation4], 0  ;;  %s1232_s0 = inlined_call_operand.vmem [shape: f32[2,128,8], index: 0, kind: input, shape index: {}]   ;;  %s1233_s1 = inlined_call_operand.vmem [shape: f32[2,8,128], index: 1, kind: input, shape index: {}]   ;;  %s1234_s2 = inlined_call_operand.hbm [shape: f32[2,1,128], index: 2, kind: output, shape index: {0}]   ;;  %s1235_s3 = inlined_call_operand.hbm [shape: f32[2,1,128], index: 3, kind: output, shape index: {1}]  }
   0x1   :  { %11 = vsyncpa [#allocation4 + $0x1], 0 }
   0x2   :  { %12 = vsyncpa [#allocation6], 0 }
   0x3   :  { %14 = vsyncpa [#allocation6 + $0x1], 0  ;;  %s1045_s12 = smov 0   ;;  %s1047_s13 = smov 0  }
   0x4   :  { %s1049_s14 = smov 0   ;;  %s1051_s15 = smov 0  }
   0x5   :  { %s1053_s16 = smov 0   ;;  %s1055_s17 = smov 0  }
   0x6 LB: > { %s775_s18 = sadd.s32 4294967295, %s1020_s17   ;;  %s776_s19 = sadd.s32 4294967294, %s1020_s17   ;;  %s1020_s17 = sphi %s1055_s17, %s20_s17   ;;  %s1016_s16 = sphi %s1053_s16, %s1242_s16   ;;  %s1012_s15 = sphi %s1051_s15, %s1241_s15   ;;  %s1008_s14 = sphi %s1049_s14, %s1240_s14   ;;  %s1004_s13 = sphi %s1047_s13, %s1239_s13   ;;  %s1000_s12 = sphi %s1045_s12, %s1238_s12  }
   0x7   : > { %s39_s20 = sadd.s32 1, %s1016_s16  ;;  %s104_s21 = sadd.s32 1, %s1008_s14 }
   0x8   : > { %p41_p0 = scmp.ge.s32.totalorder %s39_s20, 2  ;;  %p114_p1 = scmp.ne.s32.totalorder %s1008_s14, %s1004_s13 }
   0x9   : > { %p115_p2 = scmp.eq.s32.totalorder %s775_s18, 1  ;;  %p120_p3 = scmp.ne.s32.totalorder %s1004_s13, %s1000_s12 }
   0xa   : > { %s1244_s20 = smov (%p41_p0, %s39_s20), 0  ;;  %p121_p5 = scmp.eq.s32.totalorder %s776_s19, 1 }
   0xb   : > { %p1085_p4 = por %p115_p2, %p114_p1  ;;  %s99_s23 = ssub.s32 %s1016_s16, %s1244_s20 }
   0xc   : > { %p779_p6 = scmp.ge.s32.totalorder %s1020_s17, 1  ;;  %p102_p7 = scmp.eq.s32.totalorder %s99_s23, 0 }
   0xd   : > { %p1092_p8 = por %p121_p5, %p120_p3  ;;  %p188_p9 = scmp.lt.s32.totalorder %s1020_s17, 3 }
   0xe   : > { %s1098_s25 = scalar_select %p102_p7, %s1008_s14, %s104_s21  }
   0xf   : > { %p189_p10 = pnand %p779_p6, %p188_p9 }
  0x10   : > { %p227_p11 = scmp.lt.s32.totalorder (!%p189_p10), %s1012_s15, 1  ;;  %vm286_vm0 = vcmask (!%p189_p10), 64512   ;;  %s1143_s8 = sand.u32 (!%p189_p10), 1, %s1004_s13   ;;  %v1022_v17 = vmov (!%p189_p10), 1e+30  }
  0x11   : > { %192 = sbr.rel (%p189_p10) target bundleno = 467 (0x1d3), region = 28  ;;  %s1146_s9 = scalar_lea.vmem (!%p189_p10), [#allocation5], %s1143_s8 }
  0x12   : > { %268 = vst [vmem:[%s1146_s9] sm:$0x1] (!%p189_p10), %v1022_v17  ;;  %s799_s10 = sshll.u32 (!%p189_p10), %s1012_s15, 4  ;;  %s658_s21 = sshll.u32 (!%p189_p10), %s1146_s9, 4  ;;  %s659_s21 = int_to_ptr.vmem [resolvable:$true] %s658_s21 }
  0x13   : > { %s1157_s19 = scalar_lea.hbm (!%p189_p10), %s1235_s3, %s799_s10  ;;  %s632_s23 = scalar_lea.sflag (!%p189_p10), [#allocation6], %s1143_s8 }
  0x18   : > { %s228_s26 = scalar_select %p227_p11, %s1012_s15, 1 }
  0x1a   : > { %s803_s27 = sshll.u32 %s228_s26, 7  ;;  %s782_s28 = sshll.u32 %s228_s26, 3 }
  0x1b   : > { %s1105_s4 = scalar_lea.vmem %s1232_s0, %s803_s27  ;;  %s242_s7 = scalar_lea.vmem %s1233_s1, %s782_s28 }
  0x1c   : > { %v269_v0 = vld [vmem:[%s242_s7] sm:$0xff]  ;;  %v271_v2 = vld [vmem:[%s1105_s4 + $0x8] sm:$0xff]  ;;  %v272_v3 = vld [vmem:[%s1105_s4 + $0x10] sm:$0xff]  ;;  %s910_s26 = scalar_lea.vmem %s659_s21, 16  ;;  %s1023_s27 = smov [#allocation5]  }
  0x1d   : > { %v270_v1 = vld [vmem:[%s1105_s4] sm:$0xff]  ;;  %821 = vmatprep.subr.mxu0 %v269_v0  ;;  %847 = vmatprep.subr.mxu1 %v269_v0  ;;  %v279_v5 = vld [vmem:[%s1105_s4 + $0x48] sm:$0xff]  ;;  %v280_v6 = vld [vmem:[%s1105_s4 + $0x50] sm:$0xff]  ;;  %p911_p12 = scmp.ne.s32.totalorder %s659_s21, %s910_s26  ;;  %s914_s28 = sshll.u32 %s1023_s27, 4  ;;  %s915_s28 = int_to_ptr.vmem [resolvable:$false] %s914_s28 }
  0x1e   : > { %823 = vmatprep.mubr.msk.f32.mxu0 %vm286_vm0, %v270_v1  ;;  %822 = vmatpush3.msra.mxu0 %v269_v0  ;;  %v278_v4 = vld [vmem:[%s1105_s4 + $0x40] sm:$0xff]  ;;  %v273_v7 = vld [vmem:[%s1105_s4 + $0x18] sm:$0xff]  ;;  %v275_v11 = vld [vmem:[%s1105_s4 + $0x28] sm:$0xff]  ;;  %s916_s29 = scalar_lea.vmem %s915_s28, 32  ;;  %p917_p1 = scmp.lt.s32.totalorder %s659_s21, %s915_s28 }
  0x1f   : > { %824 = vmatmul.mubr.msk.f32.vlgmr.msra.gmra.mrb[0].mxu0 %vm286_vm0, %v271_v2  ;;  %848 = vmatpush3.msra.mxu1 %v269_v0  ;;  %v274_v8 = vld [vmem:[%s1105_s4 + $0x20] sm:$0xff]  ;;  %v281_v9 = vld [vmem:[%s1105_s4 + $0x58] sm:$0xff]  ;;  %v276_v12 = vld [vmem:[%s1105_s4 + $0x30] sm:$0xff]  ;;  %p912_p13 = pnand %p911_p12, %p1085_p4  ;;  %p918_p2 = scmp.lt.s32.totalorder %s916_s29, %s910_s26 }
  0x20   : > { %826 = vmatprep.mubr.msk.f32.mxu0 %vm286_vm0, %v272_v3  ;;  %835 = vmatprep.mubr.msk.f32.mxu1 %vm286_vm0, %v278_v4  ;;  %v282_v10 = vld [vmem:[%s1105_s4 + $0x60] sm:$0xff]  ;;  %v283_v13 = vld [vmem:[%s1105_s4 + $0x68] sm:$0xff]  ;;  %v284_v14 = vld [vmem:[%s1105_s4 + $0x70] sm:$0xff] }
  0x21   : > { %836 = vmatmul.mubr.msk.f32.vlgmr.msra.gmra.mrb[0].mxu1 %vm286_vm0, %v279_v5  ;;  %v277_v15 = vld [vmem:[%s1105_s4 + $0x38] sm:$0xff]  ;;  %v551_v2 = vld [vmem:[%s1146_s9] sm:$0x1]  ;;  %p913_p0 = pneg %p912_p13  ;;  %p919_p3 = por %p918_p2, %p917_p1 }
  0x22   : > { %838 = vmatprep.mubr.msk.f32.mxu1 %vm286_vm0, %v280_v6  ;;  %v285_v16 = vld [vmem:[%s1105_s4 + $0x78] sm:$0xff] }
  0x23   : > { %827 = vmatmul.mubr.msk.f32.gmra.mrb[2].mxu0 %vm286_vm0, %v273_v7  ;;  %p920_p5 = pnand %p919_p3, %p913_p0 }
  0x24   : > { %829 = vmatprep.mubr.msk.f32.mxu0 %vm286_vm0, %v274_v8 }
  0x25   : > { %839 = vmatmul.mubr.msk.f32.gmra.mrb[2].mxu1 %vm286_vm0, %v281_v9 }
  0x26   : > { %841 = vmatprep.mubr.msk.f32.mxu1 %vm286_vm0, %v282_v10 }
  0x27   : > { %830 = vmatmul.mubr.msk.f32.gmra.mrb[4].mxu0 %vm286_vm0, %v275_v11 }
  0x28   : > { %832 = vmatprep.mubr.msk.f32.mxu0 %vm286_vm0, %v276_v12 }
  0x29   : > { %842 = vmatmul.mubr.msk.f32.gmra.mrb[4].mxu1 %vm286_vm0, %v283_v13 }
  0x2a   : > { %844 = vmatprep.mubr.msk.f32.mxu1 %vm286_vm0, %v284_v14 }
  0x2b   : > { %833 = vmatmul.mubr.msk.f32.gmra.mrb[6].mxu0 %vm286_vm0, %v277_v15 }
  0x2d   : > { %845 = vmatmul.mubr.msk.f32.gmra.mrb[6].mxu1 %vm286_vm0, %v285_v16 }
  0xf2   : > { %v825_v18 = vpop.f32.mrb[0].mxu0 }
  0xf3   : > { %v401_v19 = vpop.f32.mrb[1].mxu0  ;;  %v497_v27 = vmin.f32 %v825_v18, 1e+30 }
  0xf4   : > { %v528_v20 = vmin.f32 %v401_v19, %v825_v18  ;;  %v496_v21 = vmin.f32 %v401_v19, 1e+30  ;;  %v837_v22 = vpop.f32.mrb[0].mxu1 }
  0xf5   : > { %v441_v23 = vpop.f32.mrb[1].mxu1  ;;  %v505_v61 = vmin.f32 %v837_v22, 1e+30 }
  0xf6   : > { %v828_v24 = vpop.f32.mrb[2].mxu0  ;;  %573 = vxpose.xlu0.b32.start [1/16] %v496_v21, 128  ;;  %v504_v57 = vmin.f32 %v441_v23, 1e+30 }
  0xf7   : > { %v411_v25 = vpop.f32.mrb[3].mxu0  ;;  %v499_v41 = vmin.f32 %v828_v24, 1e+30 }
  0xf8   : > { %v529_v26 = vmin.f32 %v528_v20, %v411_v25  ;;  %v840_v28 = vpop.f32.mrb[2].mxu1  ;;  %v498_v32 = vmin.f32 %v411_v25, 1e+30 }
  0xf9   : > { %v451_v29 = vpop.f32.mrb[3].mxu1  ;;  %v507_v4 = vmin.f32 %v840_v28, 1e+30 }
  0xfa   : > { %v831_v30 = vpop.f32.mrb[4].mxu0  ;;  %574 = vxpose.xlu0.b32.cont [2/16] %v497_v27, 128  ;;  %v530_v31 = vmin.f32 %v529_v26, %v828_v24  ;;  %v506_v63 = vmin.f32 %v451_v29, 1e+30 }
  0xfb   : > { %v421_v33 = vpop.f32.mrb[5].mxu0  ;;  %v501_v49 = vmin.f32 %v831_v30, 1e+30 }
  0xfc   : > { %v531_v34 = vmin.f32 %v530_v31, %v421_v33  ;;  %v843_v35 = vpop.f32.mrb[4].mxu1  ;;  %v500_v45 = vmin.f32 %v421_v33, 1e+30 }
  0xfd   : > { %v461_v36 = vpop.f32.mrb[5].mxu1  ;;  %v509_v7 = vmin.f32 %v843_v35, 1e+30 }
  0xfe   : > { %v834_v37 = vpop.f32.mrb[6].mxu0  ;;  %575 = vxpose.xlu0.b32.cont [3/16] %v498_v32, 128  ;;  %v532_v38 = vmin.f32 %v531_v34, %v831_v30  ;;  %v508_v5 = vmin.f32 %v461_v36, 1e+30 }
  0xff   : > { %v431_v39 = vpop.f32.mrb[7].mxu0  ;;  %v503_v55 = vmin.f32 %v834_v37, 1e+30 }
 0x100   : > { %v533_v40 = vmin.f32 %v532_v38, %v431_v39  ;;  %v846_v42 = vpop.f32.mrb[6].mxu1  ;;  %v502_v50 = vmin.f32 %v431_v39, 1e+30 }
 0x101   : > { %v471_v43 = vpop.f32.mrb[7].mxu1  ;;  %v511_v9 = vmin.f32 %v846_v42, 1e+30 }
 0x102   : > { %v534_v44 = vmin.f32 %v533_v40, %v834_v37  ;;  %576 = vxpose.xlu0.b32.cont [4/16] %v499_v41, 128  ;;  %v510_v8 = vmin.f32 %v471_v43, 1e+30 }
 0x104   : > { %v535_v46 = vmin.f32 %v534_v44, %v441_v23 }
 0x106   : > { %577 = vxpose.xlu0.b32.cont [5/16] %v500_v45, 128  ;;  %v536_v47 = vmin.f32 %v535_v46, %v837_v22 }
 0x108   : > { %v537_v48 = vmin.f32 %v536_v47, %v451_v29 }
 0x10a   : > { %578 = vxpose.xlu0.b32.cont [6/16] %v501_v49, 128  ;;  %v538_v51 = vmin.f32 %v537_v48, %v840_v28 }
 0x10c   : > { %v539_v52 = vmin.f32 %v538_v51, %v461_v36 }
 0x10e   : > { %579 = vxpose.xlu0.b32.cont [7/16] %v502_v50, 128  ;;  %v540_v53 = vmin.f32 %v539_v52, %v843_v35 }
 0x110   : > { %v541_v54 = vmin.f32 %v540_v53, %v471_v43 }
 0x112   : > { %v542_v56 = vmin.f32 %v541_v54, %v846_v42  ;;  %580 = vxpose.xlu0.b32.cont [8/16] %v503_v55, 128 }
 0x114   : > { %v543_v58 = vmin.f32 %v542_v56, 1e+30 }
 0x116   : > { %v544_v59 = vrot.slane %v543_v58, 4  ;;  %581 = vxpose.xlu0.b32.cont [9/16] %v504_v57, 128 }
 0x118   : > { %v545_v60 = vmin.f32 %v543_v58, %v544_v59 }
 0x11a   : > { %v546_v62 = vrot.slane %v545_v60, 2  ;;  %582 = vxpose.xlu0.b32.cont [10/16] %v505_v61, 128 }
 0x11c   : > { %v547_v0 = vmin.f32 %v545_v60, %v546_v62 }
 0x11e   : > { %v548_v1 = vrot.slane %v547_v0, 1  ;;  %583 = vxpose.xlu0.b32.cont [11/16] %v506_v63, 128 }
 0x120   : > { %v549_v3 = vmin.f32 %v547_v0, %v548_v1 }
 0x122   : > { %584 = vxpose.xlu0.b32.cont [12/16] %v507_v4, 128  ;;  %v552_v6 = vmin.f32 %v551_v2, %v549_v3 }
 0x124   : > { %553 = vst [vmem:[%s1146_s9] sm:$0x1] %v552_v6 }
 0x126   : > { %585 = vxpose.xlu0.b32.cont [13/16] %v508_v5, 128 }
 0x12a   : > { %586 = vxpose.xlu0.b32.cont [14/16] %v509_v7, 128 }
 0x12e   : > { %587 = vxpose.xlu0.b32.cont [15/16] %v510_v8, 128 }
 0x132   : > { %588 = vxpose.xlu0.b32.end [16/16] %v511_v9, 128 }
 0x133   : > { %923 = shalt.err (!%p920_p5)
}
 0x134   : > { %s924_s30 = scalar_lea.hbm %s1157_s19, 16  ;;  %s928_s6 = scalar_lea.hbm %s1235_s3, 32 }
 0x135   : > { %p925_p6 = scmp.ne.s32.totalorder %s1157_s19, %s924_s30  ;;  %p929_p10 = scmp.lt.u32.totalorder %s1157_s19, %s1235_s3 }
 0x136   : > { %p930_p11 = scmp.lt.u32.totalorder %s928_s6, %s924_s30  ;;  %p932_p13 = scmp.lt.u32.totalorder %s924_s30, %s1157_s19 }
 0x137   : > { %p926_p7 = pnand %p925_p6, %p1085_p4 }
 0x138   : > { %p931_p12 = por %p930_p11, %p929_p10 }
 0x139   : > { %p927_p9 = pneg %p926_p7 }
 0x13a   : > { %p933_p0 = por %p932_p13, %p931_p12 }
 0x13c   : > { %p934_p1 = pnand %p933_p0, %p927_p9 }
 0x13e   : > { %937 = shalt.err (!%p934_p1)
}
 0x13f   : > { %850 = dma.vmem_to_hbm [thread:$0]  (%p1085_p4), %s659_s21, 16, %s1157_s19, %s632_s23  }
 0x140   : > { %s219_s11 = scalar_lea.vmem [#allocation3], %s1143_s8  ;;  %s1184_s23 = scalar_lea.hbm %s1234_s2, %s799_s10 }
 0x141   : > { %s645_s18 = sshll.u32 %s219_s11, 4  ;;  %s628_s26 = scalar_lea.sflag [#allocation4], %s1143_s8  ;;  %s1186_s18 = int_to_ptr.vmem [resolvable:$true] %s645_s18 }
 0x142   : > { %s938_s27 = scalar_lea.vmem %s1186_s18, 16  ;;  %s1024_s28 = smov [#allocation3]  }
 0x143   : > { %p939_p2 = scmp.ne.s32.totalorder %s1186_s18, %s938_s27  ;;  %s942_s29 = sshll.u32 %s1024_s28, 4  ;;  %s943_s29 = int_to_ptr.vmem [resolvable:$false] %s942_s29 }
 0x144   : > { %s944_s15 = scalar_lea.vmem %s943_s29, 32  ;;  %p945_p6 = scmp.lt.s32.totalorder %s1186_s18, %s943_s29 }
 0x145   : > { %p940_p3 = pnand %p939_p2, %p1085_p4  ;;  %p946_p7 = scmp.lt.s32.totalorder %s944_s15, %s938_s27 }
 0x147   : > { %p941_p5 = pneg %p940_p3  ;;  %p947_p9 = por %p946_p7, %p945_p6 }
 0x149   : > { %p948_p10 = pnand %p947_p9, %p941_p5 }
 0x176   : > { %v589_v10 = vpop.trf.xlu0 }
 0x17a   : > { %v590_v11 = vpop.trf.xlu0 }
 0x17e   : > { %v591_v12 = vpop.trf.xlu0 }
 0x182   : > { %v592_v13 = vpop.trf.xlu0 }
 0x186   : > { %v593_v14 = vpop.trf.xlu0 }
 0x187   : > { %v605_v26 = vmin.f32 %v589_v10, %v593_v14 }
 0x18a   : > { %v594_v15 = vpop.trf.xlu0 }
 0x18b   : > { %v606_v24 = vmin.f32 %v590_v11, %v594_v15 }
 0x18e   : > { %v595_v16 = vpop.trf.xlu0 }
 0x18f   : > { %v607_v27 = vmin.f32 %v591_v12, %v595_v16 }
 0x192   : > { %v596_v17 = vpop.trf.xlu0 }
 0x193   : > { %v608_v28 = vmin.f32 %v592_v13, %v596_v17 }
 0x196   : > { %v597_v18 = vpop.trf.xlu0 }
 0x197   : > { %v609_v30 = vmin.f32 %v605_v26, %v597_v18 }
 0x19a   : > { %v598_v19 = vpop.trf.xlu0 }
 0x19b   : > { %v610_v29 = vmin.f32 %v606_v24, %v598_v19 }
 0x19e   : > { %v599_v20 = vpop.trf.xlu0 }
 0x19f   : > { %v611_v31 = vmin.f32 %v607_v27, %v599_v20 }
 0x1a2   : > { %v600_v21 = vpop.trf.xlu0 }
 0x1a3   : > { %v612_v32 = vmin.f32 %v608_v28, %v600_v21 }
 0x1a6   : > { %v601_v22 = vpop.trf.xlu0 }
 0x1a7   : > { %v613_v35 = vmin.f32 %v609_v30, %v601_v22 }
 0x1aa   : > { %v602_v23 = vpop.trf.xlu0 }
 0x1ab   : > { %v614_v33 = vmin.f32 %v610_v29, %v602_v23 }
 0x1ad   : > { %v617_v38 = vmin.f32 %v613_v35, %v614_v33 }
 0x1ae   : > { %v603_v25 = vpop.trf.xlu0 }
 0x1af   : > { %v615_v36 = vmin.f32 %v611_v31, %v603_v25 }
 0x1b2   : > { %v604_v34 = vpop.trf.xlu0 }
 0x1b3   : > { %v616_v37 = vmin.f32 %v612_v32, %v604_v34 }
 0x1b5   : > { %v618_v39 = vmin.f32 %v615_v36, %v616_v37 }
 0x1b7   : > { %v619_v40 = vmin.f32 %v617_v38, %v618_v39 }
 0x1b9   : > { %v620_v41 = vrot.slane %v619_v40, 4 }
 0x1bb   : > { %v621_v42 = vmin.f32 %v619_v40, %v620_v41 }
 0x1bd   : > { %v622_v43 = vrot.slane %v621_v42, 2 }
 0x1bf   : > { %v623_v44 = vmin.f32 %v621_v42, %v622_v43 }
 0x1c1   : > { %v624_v45 = vrot.slane %v623_v44, 1 }
 0x1c3   : > { %v625_v46 = vmin.f32 %v623_v44, %v624_v45 }
 0x1c5   : > { %626 = vst [vmem:[%s219_s11] sm:$0x1] %v625_v46 }
 0x1c6   : > { %951 = shalt.err (!%p948_p10)
}
 0x1c7   : > { %s952_s8 = scalar_lea.hbm %s1184_s23, 16  ;;  %s956_s4 = scalar_lea.hbm %s1234_s2, 32 }
 0x1c8   : > { %p953_p11 = scmp.ne.s32.totalorder %s1184_s23, %s952_s8  ;;  %p957_p0 = scmp.lt.u32.totalorder %s1184_s23, %s1234_s2 }
 0x1c9   : > { %p958_p1 = scmp.lt.u32.totalorder %s956_s4, %s952_s8  ;;  %p960_p3 = scmp.lt.u32.totalorder %s952_s8, %s1184_s23 }
 0x1ca   : > { %p954_p12 = pnand %p953_p11, %p1085_p4 }
 0x1cb   : > { %p959_p2 = por %p958_p1, %p957_p0 }
 0x1cc   : > { %p955_p13 = pneg %p954_p12 }
 0x1cd   : > { %p961_p5 = por %p960_p3, %p959_p2 }
 0x1cf   : > { %p962_p6 = pnand %p961_p5, %p955_p13 }
 0x1d1   : > { %965 = shalt.err (!%p962_p6)
}
 0x1d2   : > { %849 = dma.vmem_to_hbm [thread:$0]  (%p1085_p4), %s1186_s18, 16, %s1184_s23, %s628_s26  }
 0x1d3 PF: > { %p860_p7 = scmp.ge.s32.totalorder %s1020_s17, 2  ;;  %s670_s7 = sand.u32 1, %s1000_s12  }
 0x1d4   : > { %s671_s9 = scalar_lea.sflag [#allocation4], %s670_s7 }
 0x1d5   : > { %p854_p9 = pnand %p860_p7, %p1092_p8 }
 0x1d7   : > { %991 = dma.done.wait (!%p854_p9), %s671_s9, 16  }
 0x1d8   : > { %993 = vsyncadd (!%p854_p9), %s671_s9, 4294967280  ;;  %s679_s11 = scalar_lea.sflag [#allocation6], %s670_s7 }
 0x1d9   : > { %995 = dma.done.wait (!%p854_p9), %s679_s11, 16  }
 0x1da   : > { %997 = vsyncadd (!%p854_p9), %s679_s11, 4294967280  ;;  %s20_s17 = sadd.s32 1, %s1020_s17   ;;  %s1238_s12 = smov %s1004_s13 }
 0x1db   : > { %p17_p10 = scmp.ge.s32.totalorder %s20_s17, 4   ;;  %s1239_s13 = smov %s1008_s14 }
 0x1dc   : > { %s1240_s14 = smov %s1098_s25  ;;  %s1241_s15 = smov %s1016_s16 }
 0x1dd   : > { %s1242_s16 = smov %s1244_s20  ;;  %19 = sbr.rel (!%p17_p10) target bundleno = 6 (0x6), region = 96 }
 0x1e4   :  { %683 = vsyncpa [#allocation4], 1 }
 0x1e5   :  { %685 = vsyncpa [#allocation4 + $0x1], 1 }
 0x1e6   :  { %686 = vsyncpa [#allocation6], 1 }
 0x1e7   :  { %688 = vsyncpa [#allocation6 + $0x1], 1 }

</bundles_post_ra>
